<compile_context>
chip_gen: v6e
topology: v6e:2x2x1
jax: 0.10.0
libtpu: 0.0.40
codegen_flags: <defaults>
</compile_context>

<pallas_src>
import functools

import jax
import jax.numpy as jnp
from jax.experimental import pallas as pl
from jax.experimental.pallas import tpu as pltpu

_VMEM_LIMIT = 48 * 1024 * 1024  # < 64 MiB physical on v7x; > scoped defaults on v5e/v6e


def _round_up(x, m):
    return ((x + m - 1) // m) * m


# ---------------------------------------------------------------------------
# Kernel 1: generic K-accumulated row-tiled matmul     out = act(A @ B)
# ---------------------------------------------------------------------------
def _mm_acc_kernel(a_ref, b_ref, o_ref, acc_ref, *, relu):
    k = pl.program_id(1)

    @pl.when(k == 0)
    def _():
        acc_ref[...] = jnp.zeros_like(acc_ref)

    acc_ref[...] += jnp.dot(a_ref[...], b_ref[...],
                            preferred_element_type=jnp.float32)

    @pl.when(k == pl.num_programs(1) - 1)
    def _():
        acc = acc_ref[...]
        if relu:
            acc = jnp.maximum(acc, 0.0)
        o_ref[...] = acc.astype(o_ref.dtype)


def matmul_acc(a, b, *, tm, tk, relu=False, out_dtype=jnp.bfloat16):
    m, kdim = a.shape
    kdim2, n = b.shape
    assert kdim == kdim2 and m % tm == 0 and kdim % tk == 0
    return pl.pallas_call(
        functools.partial(_mm_acc_kernel, relu=relu),
        out_shape=jax.ShapeDtypeStruct((m, n), out_dtype),
        grid_spec=pltpu.PrefetchScalarGridSpec(
            num_scalar_prefetch=0,
            grid=(m // tm, kdim // tk),
            in_specs=[pl.BlockSpec((tm, tk), lambda i, k: (i, k)),
                      pl.BlockSpec((tk, n), lambda i, k: (k, 0))],
            out_specs=pl.BlockSpec((tm, n), lambda i, k: (i, 0)),
            scratch_shapes=[pltpu.VMEM((tm, n), jnp.float32)],
        ),
        compiler_params=pltpu.CompilerParams(
            dimension_semantics=("parallel", "arbitrary"),
            vmem_limit_bytes=_VMEM_LIMIT),
        cost_estimate=pl.CostEstimate(
            flops=2 * m * kdim * n, transcendentals=0,
            bytes_accessed=(m * kdim + kdim * n + m * n) * 2),
    )(a, b)


# ---------------------------------------------------------------------------
# Kernel 2: fused GCN layer 1:  hms = relu(adj @ xw) @ [Wmean | Wlogstd]
#           (hidden never leaves VMEM)
# ---------------------------------------------------------------------------
def _gcn1_fused_kernel(adj_ref, xw_ref, wms_ref, hms_ref, acc_ref):
    k = pl.program_id(1)

    @pl.when(k == 0)
    def _():
        acc_ref[...] = jnp.zeros_like(acc_ref)

    acc_ref[...] += jnp.dot(adj_ref[...], xw_ref[...],
                            preferred_element_type=jnp.float32)

    @pl.when(k == pl.num_programs(1) - 1)
    def _():
        hidden = jnp.maximum(acc_ref[...], 0.0).astype(jnp.bfloat16)   # (tm, H1)
        hms_ref[...] = jnp.dot(hidden, wms_ref[...],
                               preferred_element_type=jnp.float32
                               ).astype(hms_ref.dtype)                 # (tm, 2*H2)


def gcn1_fused(adj, xw, wms, *, tm, tk, out_dtype=jnp.bfloat16):
    m, kdim = adj.shape
    _, h1 = xw.shape
    h1b, h_ms = wms.shape
    assert h1 == h1b and m % tm == 0 and kdim % tk == 0
    return pl.pallas_call(
        _gcn1_fused_kernel,
        out_shape=jax.ShapeDtypeStruct((m, h_ms), out_dtype),
        grid_spec=pltpu.PrefetchScalarGridSpec(
            num_scalar_prefetch=0,
            grid=(m // tm, kdim // tk),
            in_specs=[pl.BlockSpec((tm, tk), lambda i, k: (i, k)),
                      pl.BlockSpec((tk, h1), lambda i, k: (k, 0)),
                      pl.BlockSpec((h1, h_ms), lambda i, k: (0, 0))],   # resident weights
            out_specs=pl.BlockSpec((tm, h_ms), lambda i, k: (i, 0)),
            scratch_shapes=[pltpu.VMEM((tm, h1), jnp.float32)],
        ),
        compiler_params=pltpu.CompilerParams(
            dimension_semantics=("parallel", "arbitrary"),
            vmem_limit_bytes=_VMEM_LIMIT),
        cost_estimate=pl.CostEstimate(
            flops=2 * m * kdim * h1 + 2 * m * h1 * h_ms, transcendentals=0,
            bytes_accessed=(m * kdim + kdim * h1 + h1 * h_ms + m * h_ms) * 2),
    )(adj, xw, wms)


# ---------------------------------------------------------------------------
# Kernel 3: adj @ [hidden@Wmean | hidden@Wlogstd] + fused reparam sample
# ---------------------------------------------------------------------------
def _adj_mm_sample_kernel(adj_ref, hms_ref, noise_ref, z_ref, acc_ref, *, h2):
    k = pl.program_id(1)

    @pl.when(k == 0)
    def _():
        acc_ref[...] = jnp.zeros_like(acc_ref)

    acc_ref[...] += jnp.dot(adj_ref[...], hms_ref[...],
                            preferred_element_type=jnp.float32)

    @pl.when(k == pl.num_programs(1) - 1)
    def _():
        ms = acc_ref[...]                      # (tm, 2*h2) f32 = [mean | logstd]
        mean = ms[:, :h2]
        logstd = ms[:, h2:]
        # reparameterization sample, kept in f32 (v5e has no bf16 VPU/EUP)
        z = noise_ref[...] * jnp.exp(logstd) + mean
        z_ref[...] = z.astype(z_ref.dtype)


def adj_matmul_sample(adj, hms, noise, *, h2, tm, tk, out_dtype=jnp.bfloat16):
    m, kdim = adj.shape
    _, h = hms.shape
    assert h == 2 * h2 and m % tm == 0 and kdim % tk == 0
    return pl.pallas_call(
        functools.partial(_adj_mm_sample_kernel, h2=h2),
        out_shape=jax.ShapeDtypeStruct((m, h2), out_dtype),
        grid_spec=pltpu.PrefetchScalarGridSpec(
            num_scalar_prefetch=0,
            grid=(m // tm, kdim // tk),
            in_specs=[pl.BlockSpec((tm, tk), lambda i, k: (i, k)),
                      pl.BlockSpec((tk, h), lambda i, k: (k, 0)),
                      pl.BlockSpec((tm, h2), lambda i, k: (i, 0))],
            out_specs=pl.BlockSpec((tm, h2), lambda i, k: (i, 0)),
            scratch_shapes=[pltpu.VMEM((tm, h), jnp.float32)],
        ),
        compiler_params=pltpu.CompilerParams(
            dimension_semantics=("parallel", "arbitrary"),
            vmem_limit_bytes=_VMEM_LIMIT),
        cost_estimate=pl.CostEstimate(
            flops=2 * m * kdim * h, transcendentals=m * h2,
            bytes_accessed=(m * kdim + kdim * h) * 2 + m * h2 * 4 + m * h2 * 2),
    )(adj, hms, noise)


# ---------------------------------------------------------------------------
# Kernel 4: decode  A_pred = sigmoid(Z @ Z.T)   — lane-dense (tm, tn) f32 tiles
# ---------------------------------------------------------------------------
def _decode_kernel(zr_ref, zc_ref, o_ref):
    s = jax.lax.dot_general(
        zr_ref[...], zc_ref[...],
        dimension_numbers=(((1,), (1,)), ((), ())),       # contract hidden dim: Z @ Z.T
        preferred_element_type=jnp.float32)
    o_ref[...] = jax.nn.sigmoid(s).astype(o_ref.dtype)


def decode(z, *, tm, tn):
    m, h2 = z.shape
    assert m % tm == 0 and m % tn == 0
    return pl.pallas_call(
        _decode_kernel,
        out_shape=jax.ShapeDtypeStruct((m, m), jnp.float32),
        grid_spec=pltpu.PrefetchScalarGridSpec(
            num_scalar_prefetch=0,
            grid=(m // tm, m // tn),
            in_specs=[pl.BlockSpec((tm, h2), lambda i, j: (i, 0)),
                      pl.BlockSpec((tn, h2), lambda i, j: (j, 0))],
            out_specs=pl.BlockSpec((tm, tn), lambda i, j: (i, j)),
        ),
        compiler_params=pltpu.CompilerParams(
            dimension_semantics=("parallel", "parallel"),
            vmem_limit_bytes=_VMEM_LIMIT),
        cost_estimate=pl.CostEstimate(
            flops=2 * m * m * h2, transcendentals=m * m,
            bytes_accessed=2 * m * h2 * 2 + m * m * 4),
    )(z, z)


# ---------------------------------------------------------------------------
# Wrapper: VGAE.forward
# ---------------------------------------------------------------------------
def vgae_forward(x, adj, w0, w_mean, w_logstd, noise, *, max_tile=512):
    """VGAE.forward -> A_pred = sigmoid(Z @ Z.T), shape (N, N)."""
    n = adj.shape[0]
    f = x.shape[1]
    h2 = w_mean.shape[1]

    # node-row tile / feature (contraction) tile; pad so grids divide evenly
    # and everything stays (8,128)-friendly.
    tile = min(max_tile, _round_up(n, 128))
    n_pad = _round_up(n, tile)
    f_tile = min(max_tile, _round_up(f, 128))
    f_pad = _round_up(f, f_tile)

    if n_pad != n:
        adj = jnp.pad(adj, ((0, n_pad - n), (0, n_pad - n)))
        noise = jnp.pad(noise, ((0, n_pad - n), (0, 0)))
    if n_pad != n or f_pad != f:
        x = jnp.pad(x, ((0, n_pad - n), (0, f_pad - f)))
    if f_pad != f:
        w0 = jnp.pad(w0, ((0, f_pad - f), (0, 0)))

    # bf16 matmul operands (f32 accumulation / elementwise inside the kernels)
    adj_b = adj.astype(jnp.bfloat16)
    x_b = x.astype(jnp.bfloat16)
    w0_b = w0.astype(jnp.bfloat16)
    w_ms_b = jnp.concatenate([w_mean, w_logstd], axis=1).astype(jnp.bfloat16)
    noise_f = noise.astype(jnp.float32)

    # layer 1 feature transform:  xw = X @ W0
    xw = matmul_acc(x_b, w0_b, tm=tile, tk=f_tile)                        # (n_pad, H1)

    # layer 1 aggregate + relu fused with layers 2&3 weight projection:
    #   hms = relu(adj @ xw) @ [W_mean | W_logstd]
    hms = gcn1_fused(adj_b, xw, w_ms_b, tm=tile, tk=tile)                 # (n_pad, 2*H2)

    # layers 2&3 aggregate + reparameterization sample fused into finalize
    z = adj_matmul_sample(adj_b, hms, noise_f, h2=h2, tm=tile, tk=tile)   # (n_pad, H2)

    # decode: A_pred = sigmoid(Z @ Z.T)
    a_pred = decode(z, tm=tile, tn=tile)                                  # (n_pad, n_pad)
    return a_pred[:n, :n]


# ---------------------------------------------------------------------------
# Pure-jnp reference mirroring the kernel dtype policy (sanity check)
# ---------------------------------------------------------------------------
def vgae_reference(x, adj, w0, w_mean, w_logstd, noise):
    bf16, f32 = jnp.bfloat16, jnp.float32
    h2 = w_mean.shape[1]
    adj_b, x_b = adj.astype(bf16), x.astype(bf16)
    w0_b = w0.astype(bf16)
    w_ms_b = jnp.concatenate([w_mean, w_logstd], axis=1).astype(bf16)

    xw = jnp.dot(x_b, w0_b, preferred_element_type=f32).astype(bf16)
    hidden = jnp.maximum(jnp.dot(adj_b, xw, preferred_element_type=f32), 0.0).astype(bf16)
    hms = jnp.dot(hidden, w_ms_b, preferred_element_type=f32).astype(bf16)
    ms = jnp.dot(adj_b, hms, preferred_element_type=f32)
    mean, logstd = ms[:, :h2], ms[:, h2:]
    z = (noise.astype(f32) * jnp.exp(logstd) + mean).astype(bf16)
    logits = jnp.dot(z, z.T, preferred_element_type=f32)
    return jax.nn.sigmoid(logits)


def glorot(key, fan_in, fan_out):
    limit = (6.0 / (fan_in + fan_out)) ** 0.5
    return jax.random.uniform(key, (fan_in, fan_out), jnp.float32, -limit, limit)


if __name__ == "__main__":
    N = 300          # number of graph nodes (input_dim = adj.shape[0])
    H1 = 64          # args.hidden1_dim
    H2 = 32          # args.hidden2_dim

    key = jax.random.PRNGKey(0)
    k_adj, k_x, k_w0, k_wm, k_ws, k_noise = jax.random.split(key, 6)

    # symmetric, normalized-adjacency-like matrix + identity-ish node features
    a = jax.random.uniform(k_adj, (N, N), jnp.float32)
    adj = (a + a.T) / (2.0 * N)
    x = jnp.eye(N, dtype=jnp.float32) + 0.01 * jax.random.normal(k_x, (N, N))

    w0 = glorot(k_w0, N, H1)
    w_mean = glorot(k_wm, H1, H2)
    w_logstd = glorot(k_ws, H1, H2)

    # TODO(synk): noise (torch.randn equivalent) is drawn with jax.random outside
    # the kernel; an in-kernel pltpu.stateful_normal draw would also work.
    noise = jax.random.normal(k_noise, (N, H2), jnp.float32)

    a_pred = vgae_forward(x, adj, w0, w_mean, w_logstd, noise, max_tile=128)
    a_pred = jax.block_until_ready(a_pred)

    ref = vgae_reference(x, adj, w0, w_mean, w_logstd, noise)

    assert a_pred.shape == (N, N)
    assert bool(jnp.all(jnp.isfinite(a_pred)))
    assert bool(jnp.all((a_pred >= 0.0) & (a_pred <= 1.0)))
    assert float(jnp.max(jnp.abs(a_pred - ref))) < 5e-2
    print("KERNEL_OK")
</pallas_src>

<mosaic_0001>
module attributes {stable_mosaic.version = 11 : i64} {
  func.func @_mm_acc_kernel(%arg0: i32, %arg1: i32, %arg2: memref<128x128xbf16, #tpu.memory_space<vmem>>, %arg3: memref<128x64xbf16, #tpu.memory_space<vmem>>, %arg4: memref<128x64xbf16, #tpu.memory_space<vmem>>, %arg5: memref<128x64xf32, #tpu.memory_space<vmem>>) attributes {dimension_semantics = [#tpu.dimension_semantics<parallel>, #tpu.dimension_semantics<arbitrary>], iteration_bounds = array<i64: 3, 3>, scalar_prefetch = 0 : i64, scratch_operands = 1 : i64, tpu.core_type = #tpu.core_type<tc>, window_params = [{transform_indices = @transform_0, window_bounds = array<i64: 128, 128>}, {transform_indices = @transform_1, window_bounds = array<i64: 128, 64>}, {transform_indices = @transform_2, window_bounds = array<i64: 128, 64>}]} {
    %c0_i32 = arith.constant 0 : i32
    %0 = arith.cmpi eq, %arg1, %c0_i32 : i32
    %1 = arith.extui %0 : i1 to i32
    %c0_i32_0 = arith.constant 0 : i32
    %2 = arith.cmpi ne, %1, %c0_i32_0 : i32
    scf.if %2 {
      %cst_9 = arith.constant 0.000000e+00 : f32
      %12 = vector.broadcast %cst_9 : f32 to vector<128x64xf32>
      %c0_10 = arith.constant 0 : index
      %c0_11 = arith.constant 0 : index
      %13 = vector.load %arg5[%c0_10, %c0_11] : memref<128x64xf32, #tpu.memory_space<vmem>>, vector<128x64xf32>
      tpu.vector_store %arg5[%c0_10, %c0_11], %12 {strides = array<i32>} : memref<128x64xf32, #tpu.memory_space<vmem>>, vector<128x64xf32>,
    } else {
    }
    %c0 = arith.constant 0 : index
    %c0_1 = arith.constant 0 : index
    %3 = vector.load %arg5[%c0, %c0_1] : memref<128x64xf32, #tpu.memory_space<vmem>>, vector<128x64xf32>
    %c0_2 = arith.constant 0 : index
    %c0_3 = arith.constant 0 : index
    %4 = vector.load %arg2[%c0_2, %c0_3] : memref<128x128xbf16, #tpu.memory_space<vmem>>, vector<128x128xbf16>
    %c0_4 = arith.constant 0 : index
    %c0_5 = arith.constant 0 : index
    %5 = vector.load %arg3[%c0_4, %c0_5] : memref<128x64xbf16, #tpu.memory_space<vmem>>, vector<128x64xbf16>
    %cst = arith.constant dense<0.000000e+00> : vector<128x64xf32>
    %6 = tpu.matmul %4, %5, %cst {dimension_numbers = #tpu.dot_dimension_numbers<[1], [0], [0], [1], [0, 0, 1, 1], [], []>} : vector<128x128xbf16>, vector<128x64xbf16>, vector<128x64xf32> -> vector<128x64xf32>
    %7 = arith.addf %3, %6 : vector<128x64xf32>
    %c0_6 = arith.constant 0 : index
    %c0_7 = arith.constant 0 : index
    %8 = vector.load %arg5[%c0_6, %c0_7] : memref<128x64xf32, #tpu.memory_space<vmem>>, vector<128x64xf32>
    tpu.vector_store %arg5[%c0_6, %c0_7], %7 {strides = array<i32>} : memref<128x64xf32, #tpu.memory_space<vmem>>, vector<128x64xf32>,
    %c2_i32 = arith.constant 2 : i32
    %9 = arith.cmpi eq, %arg1, %c2_i32 : i32
    %10 = arith.extui %9 : i1 to i32
    %c0_i32_8 = arith.constant 0 : i32
    %11 = arith.cmpi ne, %10, %c0_i32_8 : i32
    scf.if %11 {
      %c0_9 = arith.constant 0 : index
      %c0_10 = arith.constant 0 : index
      %12 = vector.load %arg5[%c0_9, %c0_10] : memref<128x64xf32, #tpu.memory_space<vmem>>, vector<128x64xf32>
      %13 = arith.truncf %12 : vector<128x64xf32> to vector<128x64xbf16>
      %c0_11 = arith.constant 0 : index
      %c0_12 = arith.constant 0 : index
      %14 = vector.load %arg4[%c0_11, %c0_12] : memref<128x64xbf16, #tpu.memory_space<vmem>>, vector<128x64xbf16>
      tpu.vector_store %arg4[%c0_11, %c0_12], %13 {strides = array<i32>} : memref<128x64xbf16, #tpu.memory_space<vmem>>, vector<128x64xbf16>,
    } else {
    }
    return
  }
  func.func @transform_0(%arg0: i32, %arg1: i32) -> (i32, i32) {
    %c0_i32 = arith.constant 0 : i32
    return %arg0, %arg1 : i32, i32
  }
  func.func @transform_1(%arg0: i32, %arg1: i32) -> (i32, i32) {
    %c0_i32 = arith.constant 0 : i32
    %c0_i32_0 = arith.constant 0 : i32
    return %arg1, %c0_i32 : i32, i32
  }
  func.func @transform_2(%arg0: i32, %arg1: i32) -> (i32, i32) {
    %c0_i32 = arith.constant 0 : i32
    %c0_i32_0 = arith.constant 0 : i32
    return %arg0, %c0_i32 : i32, i32
  }
}

</mosaic_0001>

<bundles_post_ra>
// kernel: tpu_custom_call.1
= control target key start
LH: loop header
LB: loop body
LE: loop exit
PB: predicated region body
PF: predicated region fallthrough
CT: control target
= control target key end

     0   :  { %7 = vsyncpa [#allocation4], 0  ;;  %s1246_s0 = inlined_call_operand.hbm [shape: bf16[384,384], index: 0, kind: input, shape index: {}]   ;;  %s1247_s1 = inlined_call_operand.vmem [shape: bf16[384,64], index: 1, kind: input, shape index: {}]   ;;  %s1248_s2 = inlined_call_operand.vmem [shape: bf16[384,64], index: 2, kind: output, shape index: {}]  }
   0x1   :  { %9 = vsyncpa [#allocation4 + $0x1], 0  ;;  %s1032_s9 = smov 0   ;;  %s1034_s10 = smov 0  }
   0x2   :  { %s1036_s11 = smov 0   ;;  %s1038_s12 = smov 0  }
   0x3   :  { %s1040_s13 = smov 0   ;;  %s1042_s14 = smov 0  }
   0x4   :  { %s1044_s15 = smov 0   ;;  %s1046_s16 = smov 0  }
   0x5 LB: > { %s694_s17 = sadd.s32 4294967295, %s1010_s16   ;;  %s24_s18 = sadd.s32 1, %s1002_s14  ;;  %s1010_s16 = sphi %s1046_s16, %s15_s16   ;;  %s1006_s15 = sphi %s1044_s15, %s1258_s15   ;;  %s1002_s14 = sphi %s1042_s14, %s1257_s14   ;;  %s998_s13 = sphi %s1040_s13, %s1256_s13   ;;  %s994_s12 = sphi %s1038_s12, %s1255_s12   ;;  %s990_s11 = sphi %s1036_s11, %s1254_s11   ;;  %s986_s10 = sphi %s1034_s10, %s1253_s10   ;;  %s982_s9 = sphi %s1032_s9, %s1252_s9  }
   0x6   : > { %p25_p0 = scmp.ge.s32.totalorder %s24_s18, 3  ;;  %s27_s19 = sadd.s32 1, %s1006_s15 }
   0x7   : > { %s36_s20 = sadd.s32 1, %s990_s11  ;;  %p43_p1 = scmp.ne.s32.totalorder %s990_s11, %s986_s10 }
   0x8   : > { %s1260_s18 = smov (%p25_p0, %s24_s18), 0  ;;  %s1262_s19 = smov (!%p25_p0, %s27_s19), %s1006_s15 }
   0x9   : > { %s32_s21 = ssub.s32 %s1002_s14, %s1260_s18  ;;  %p44_p2 = scmp.eq.s32.totalorder %s1010_s16, 0 }
   0xa   : > { %p29_p3 = scmp.ge.s32.totalorder %s1262_s19, 3  ;;  %p49_p4 = scmp.ne.s32.totalorder %s986_s10, %s982_s9 }
   0xb   : > { %p1083_p5 = por %p44_p2, %p43_p1  ;;  %p50_p6 = scmp.eq.s32.totalorder %s694_s17, 0 }
   0xc   : > { %s1264_s19 = smov (%p29_p3, %s1262_s19), 0  ;;  %p831_p8 = scmp.lt.s32.totalorder %s1010_s16, 9 }
   0xd   : > { %p1089_p7 = por %p50_p6, %p49_p4  ;;  %s31_s24 = ssub.s32 %s1006_s15, %s1264_s19 }
   0xe   : > { %s33_s25 = sor.u32 %s32_s21, %s31_s24  ;;  %s125_s26 = sand.u32 1, %s990_s11  }
   0xf   : > { %p34_p9 = scmp.eq.s32.totalorder %s33_s25, 0  ;;  %s698_s27 = sshll.u32 %s125_s26, 6 }
  0x10   : > { %s824_s28 = smul.u32 48, %s1006_s15  ;;  %s129_s4 = scalar_lea.vmem [#allocation3], %s698_s27 }
  0x11   : > { %s1099_s29 = scalar_select %p34_p9, %s990_s11, %s36_s20  }
  0x12   : > { %s135_s30 = sadd.s32 %s1002_s14, %s824_s28  ;;  %s138_s5 = sshll.u32 %s129_s4, 4  ;;  %s139_s5 = int_to_ptr.vmem [resolvable:$true] %s138_s5 }
  0x13   : > { %s701_s3 = sshll.u32 %s135_s30, 6  ;;  %p1109_p10 = pnand %p831_p8, %p1083_p5 }
  0x14   : > { %s137_s8 = scalar_lea.hbm %s1246_s0, %s701_s3  ;;  %p702_p11 = scmp.ge.s32.totalorder %s1010_s16, 1 }
  0x15   : > { %s126_s17 = scalar_lea.sflag [#allocation4], %s125_s26  ;;  %p918_p12 = pneg %p1109_p10 }
  0x16   : > { %s929_s20 = scalar_lea.vmem %s139_s5, 1024  ;;  %s1012_s21 = smov [#allocation3]  }
  0x17   : > { %p930_p13 = scmp.ne.s32.totalorder %s139_s5, %s929_s20  ;;  %s934_s24 = sshll.u32 %s1012_s21, 4  ;;  %s935_s24 = int_to_ptr.vmem [resolvable:$false] %s934_s24 }
  0x18   : > { %s936_s25 = scalar_lea.vmem %s935_s24, 2048  ;;  %p937_p2 = scmp.lt.s32.totalorder %s139_s5, %s935_s24 }
  0x19   : > { %p932_p0 = pnand %p930_p13, %p918_p12  ;;  %p938_p3 = scmp.lt.s32.totalorder %s936_s25, %s929_s20 }
  0x1b   : > { %p933_p1 = pneg %p932_p0  ;;  %p939_p4 = por %p938_p3, %p937_p2 }
  0x1d   : > { %p940_p5 = pnand %p939_p4, %p933_p1 }
  0x1f   : > { %943 = shalt.err (!%p940_p5)
}
  0x20   : > { %s1013_s22 = smov 192   ;;  %s1014_s26 = smov 64  }
  0x21   : > { %s1015_s27 = smov 4   ;;  %p155_p6 = scmp.lt.s32.totalorder %s1010_s16, 10 }
  0x22   : > { %830 = dma.hbm_to_vmem [thread:$0]  (!%p1109_p10), %s137_s8, 1024, %s139_s5, %s126_s17, %s1013_s22, %s1014_s26, %s1015_s27  }
  0x23   : > { %p156_p8 = pnand %p702_p11, %p155_p6 }
  0x24   : > { %s161_s28 = sand.u32 (!%p156_p8), 1, %s986_s10  }
  0x25   : > { %159 = sbr.rel (%p156_p8) target bundleno = 317 (0x13d), region = 28  ;;  %s703_s30 = sshll.u32 (!%p156_p8), %s161_s28, 6 }
  0x26   : > { %s162_s3 = scalar_lea.sflag (!%p156_p8), [#allocation4], %s161_s28  ;;  %s1122_s4 = scalar_lea.vmem (!%p156_p8), [#allocation3], %s703_s30 }
  0x2a   : > { %977 = dma.done.wait (%p1089_p7), %s162_s3, 1024  }
  0x2b   : > { %979 = vsyncadd (%p1089_p7), %s162_s3, 4294966272  ;;  %s704_s6 = sshll.u32 %s994_s12, 4  ;;  %s706_s5 = sshll.u32 %s998_s13, 4 }
  0x2c   : > { %p193_p9 = scmp.lt.s32.totalorder %s704_s6, 47  ;;  %p199_p10 = scmp.lt.s32.totalorder %s706_s5, 47 }
  0x2d   : > { %p708_p7 = scmp.ne.s32.totalorder %s994_s12, 0 }
  0x2e   : > { %s1266_s6 = smov (!%p193_p9, %s704_s6), 47  ;;  %s1268_s5 = smov (!%p199_p10, %s706_s5), 47 }
  0x2f   : > { %s705_s7 = sshll.u32 %s1266_s6, 2  ;;  %s707_s20 = sshll.u32 %s1268_s5, 2 }
  0x30   : > { %s1133_s17 = scalar_lea.vmem %s1247_s1, %s705_s7  ;;  %s1138_s23 = scalar_lea.vmem %s1248_s2, %s707_s20 }
  0x31   : > { %208 = sbr.rel (%p708_p7) target bundleno = 63 (0x3f), region = 36 }
  0x36   : > { %vm209_vm0 = vcmask 523264   ;;  %v1016_v0 = vmov 0.0  }
  0x37   : > { %210 = vst.msk [vmem:[#allocation2] sm:$0xff] %vm209_vm0, %v1016_v0  ;;  %211 = vst.msk [vmem:[#allocation2 + $0x8] sm:$0xff] %vm209_vm0, %v1016_v0 }
  0x38   : > { %212 = vst.msk [vmem:[#allocation2 + $0x10] sm:$0xff] %vm209_vm0, %v1016_v0  ;;  %213 = vst.msk [vmem:[#allocation2 + $0x18] sm:$0xff] %vm209_vm0, %v1016_v0 }
  0x39   : > { %214 = vst.msk [vmem:[#allocation2 + $0x20] sm:$0xff] %vm209_vm0, %v1016_v0  ;;  %215 = vst.msk [vmem:[#allocation2 + $0x28] sm:$0xff] %vm209_vm0, %v1016_v0 }
  0x3a   : > { %216 = vst.msk [vmem:[#allocation2 + $0x30] sm:$0xff] %vm209_vm0, %v1016_v0  ;;  %217 = vst.msk [vmem:[#allocation2 + $0x38] sm:$0xff] %vm209_vm0, %v1016_v0 }
  0x3b   : > { %218 = vst.msk [vmem:[#allocation2 + $0x40] sm:$0xff] %vm209_vm0, %v1016_v0  ;;  %219 = vst.msk [vmem:[#allocation2 + $0x48] sm:$0xff] %vm209_vm0, %v1016_v0 }
  0x3c   : > { %220 = vst.msk [vmem:[#allocation2 + $0x50] sm:$0xff] %vm209_vm0, %v1016_v0  ;;  %221 = vst.msk [vmem:[#allocation2 + $0x58] sm:$0xff] %vm209_vm0, %v1016_v0 }
  0x3d   : > { %222 = vst.msk [vmem:[#allocation2 + $0x60] sm:$0xff] %vm209_vm0, %v1016_v0  ;;  %223 = vst.msk [vmem:[#allocation2 + $0x68] sm:$0xff] %vm209_vm0, %v1016_v0 }
  0x3e   : > { %224 = vst.msk [vmem:[#allocation2 + $0x70] sm:$0xff] %vm209_vm0, %v1016_v0  ;;  %225 = vst.msk [vmem:[#allocation2 + $0x78] sm:$0xff] %vm209_vm0, %v1016_v0 }
  0x3f PF: > { %v900_v1 = vld [vmem:[%s1133_s17 + $0x38] sm:$0xff]   ;;  %v901_v2 = vld [vmem:[%s1133_s17 + $0x30] sm:$0xff]   ;;  %v902_v3 = vld [vmem:[%s1133_s17 + $0x28] sm:$0xff]   ;;  %vm483_vm1 = vcmask 523264   ;;  %p725_p11 = scmp.ne.s32.totalorder %s994_s12, 2 }
  0x40   : > { %776 = vmatprep.subr.bf16.mxu0 %v900_v1  ;;  %808 = vmatprep.subr.bf16.mxu1 %v900_v1  ;;  %v903_v4 = vld [vmem:[%s1133_s17 + $0x20] sm:$0xff]   ;;  %v904_v7 = vld [vmem:[%s1133_s17 + $0x18] sm:$0xff]   ;;  %v905_v8 = vld [vmem:[%s1133_s17 + $0x10] sm:$0xff]  }
  0x41   : > { %777 = vmatpush3.bf16.msra.mxu0 %v900_v1  ;;  %816 = vmatpush3.bf16.msra.mxu1 %v900_v1  ;;  %v908_v5 = vld [vmem:[%s1122_s4] sm:$0xff]   ;;  %v906_v9 = vld [vmem:[%s1133_s17 + $0x8] sm:$0xff]   ;;  %v912_v13 = vld [vmem:[%s1122_s4 + $0x10] sm:$0xff]  }
  0x42   : > { %778 = vmatprep.subr.bf16.mxu0 %v901_v2  ;;  %809 = vmatprep.subr.bf16.mxu1 %v901_v2  ;;  %v909_v6 = vld [vmem:[%s1122_s4 + $0x20] sm:$0xff]   ;;  %v910_v11 = vld [vmem:[%s1122_s4 + $0x8] sm:$0xff]   ;;  %v913_v14 = vld [vmem:[%s1122_s4 + $0x30] sm:$0xff]  }
  0x43   : > { %792 = vmatprep.mubr.bf16.mxu0 %v908_v5  ;;  %800 = vmatprep.mubr.bf16.mxu1 %v909_v6  ;;  %v907_v10 = vld [vmem:[%s1133_s17] sm:$0xff]   ;;  %v911_v12 = vld [vmem:[%s1122_s4 + $0x28] sm:$0xff]   ;;  %v914_v15 = vld [vmem:[%s1122_s4 + $0x18] sm:$0xff]  }
  0x44   : > { %v915_v16 = vld [vmem:[%s1122_s4 + $0x38] sm:$0xff]   ;;  %v228_v17 = vld [vmem:[#allocation2 + $0x10] sm:$0xff]  ;;  %v226_v21 = vld [vmem:[#allocation2] sm:$0xff] }
  0x45   : > { %779 = vmatpush3.bf16.msra.mxu0 %v901_v2  ;;  %817 = vmatpush3.bf16.msra.mxu1 %v901_v2  ;;  %v236_v18 = vld [vmem:[#allocation2 + $0x50] sm:$0xff]  ;;  %v234_v22 = vld [vmem:[#allocation2 + $0x40] sm:$0xff]  ;;  %v229_v27 = vld [vmem:[#allocation2 + $0x18] sm:$0xff] }
  0x46   : > { %780 = vmatprep.subr.bf16.mxu0 %v902_v3  ;;  %810 = vmatprep.subr.bf16.mxu1 %v902_v3  ;;  %v237_v28 = vld [vmem:[#allocation2 + $0x58] sm:$0xff]  ;;  %v227_v33 = vld [vmem:[#allocation2 + $0x8] sm:$0xff]  ;;  %v232_v39 = vld [vmem:[#allocation2 + $0x30] sm:$0xff] }
  0x47   : > { %v235_v34 = vld [vmem:[#allocation2 + $0x48] sm:$0xff]  ;;  %v240_v40 = vld [vmem:[#allocation2 + $0x70] sm:$0xff]  ;;  %v230_v45 = vld [vmem:[#allocation2 + $0x20] sm:$0xff] }
  0x48   : > { %v238_v46 = vld [vmem:[#allocation2 + $0x60] sm:$0xff]  ;;  %v233_v51 = vld [vmem:[#allocation2 + $0x38] sm:$0xff]  ;;  %v231_v57 = vld [vmem:[#allocation2 + $0x28] sm:$0xff] }
  0x49   : > { %781 = vmatpush3.bf16.msra.mxu0 %v902_v3  ;;  %818 = vmatpush3.bf16.msra.mxu1 %v902_v3  ;;  %v241_v52 = vld [vmem:[#allocation2 + $0x78] sm:$0xff]  ;;  %v239_v58 = vld [vmem:[#allocation2 + $0x68] sm:$0xff] }
  0x4a   : > { %782 = vmatprep.subr.bf16.mxu0 %v903_v4  ;;  %811 = vmatprep.subr.bf16.mxu1 %v903_v4 }
  0x4d   : > { %783 = vmatpush3.bf16.msra.mxu0 %v903_v4  ;;  %819 = vmatpush3.bf16.msra.mxu1 %v903_v4 }
  0x4e   : > { %784 = vmatprep.subr.bf16.mxu0 %v904_v7  ;;  %812 = vmatprep.subr.bf16.mxu1 %v904_v7 }
  0x51   : > { %785 = vmatpush3.bf16.msra.mxu0 %v904_v7  ;;  %820 = vmatpush3.bf16.msra.mxu1 %v904_v7 }
  0x52   : > { %786 = vmatprep.subr.bf16.mxu0 %v905_v8  ;;  %813 = vmatprep.subr.bf16.mxu1 %v905_v8 }
  0x55   : > { %787 = vmatpush3.bf16.msra.mxu0 %v905_v8  ;;  %821 = vmatpush3.bf16.msra.mxu1 %v905_v8 }
  0x56   : > { %788 = vmatprep.subr.bf16.mxu0 %v906_v9  ;;  %814 = vmatprep.subr.bf16.mxu1 %v906_v9 }
  0x59   : > { %789 = vmatpush3.bf16.msra.mxu0 %v906_v9  ;;  %822 = vmatpush3.bf16.msra.mxu1 %v906_v9 }
  0x5a   : > { %790 = vmatprep.subr.bf16.mxu0 %v907_v10  ;;  %815 = vmatprep.subr.bf16.mxu1 %v907_v10 }
  0x5d   : > { %791 = vmatpush3.bf16.msra.mxu0 %v907_v10  ;;  %823 = vmatpush3.bf16.msra.mxu1 %v907_v10 }
  0x60   : > { %793 = vmatmul.mubr.bf16.vlgmr.msra.gmra.mxu0 %v910_v11  ;;  %801 = vmatmul.mubr.bf16.vlgmr.msra.gmra.mxu1 %v911_v12 }
  0x61   : > { %796 = vmatprep.mubr.bf16.mxu0 %v912_v13  ;;  %804 = vmatprep.mubr.bf16.mxu1 %v913_v14 }
  0x68   : > { %797 = vmatmul.mubr.bf16.gmra.mxu0 %v914_v15  ;;  %805 = vmatmul.mubr.bf16.gmra.mxu1 %v915_v16 }
 0x120   : > { %v794_v19 = vpop.f32.mrf.mxu0  ;;  %v802_v20 = vpop.f32.mrf.mxu1 }
 0x121   : > { %v469_v23 = vadd.f32 %v794_v19, %v228_v17  ;;  %v477_v24 = vadd.f32 %v802_v20, %v236_v18 }
 0x122   : > { %v404_v25 = vpop.f32.mrf.mxu0  ;;  %v436_v26 = vpop.f32.mrf.mxu1 }
 0x123   : > { %486 = vst.msk [vmem:[#allocation2 + $0x10] sm:$0xff] %vm483_vm1, %v469_v23  ;;  %494 = vst.msk [vmem:[#allocation2 + $0x50] sm:$0xff] %vm483_vm1, %v477_v24  ;;  %v467_v29 = vadd.f32 %v404_v25, %v226_v21  ;;  %v475_v30 = vadd.f32 %v436_v26, %v234_v22 }
 0x124   : > { %v795_v31 = vpop.f32.mrf.mxu0  ;;  %v803_v32 = vpop.f32.mrf.mxu1 }
 0x125   : > { %484 = vst.msk [vmem:[#allocation2] sm:$0xff] %vm483_vm1, %v467_v29  ;;  %492 = vst.msk [vmem:[#allocation2 + $0x40] sm:$0xff] %vm483_vm1, %v475_v30  ;;  %v470_v35 = vadd.f32 %v795_v31, %v229_v27  ;;  %v478_v36 = vadd.f32 %v803_v32, %v237_v28 }
 0x126   : > { %v407_v37 = vpop.f32.mrf.mxu0  ;;  %v439_v38 = vpop.f32.mrf.mxu1 }
 0x127   : > { %487 = vst.msk [vmem:[#allocation2 + $0x18] sm:$0xff] %vm483_vm1, %v470_v35  ;;  %495 = vst.msk [vmem:[#allocation2 + $0x58] sm:$0xff] %vm483_vm1, %v478_v36  ;;  %v468_v41 = vadd.f32 %v407_v37, %v227_v33  ;;  %v476_v42 = vadd.f32 %v439_v38, %v235_v34 }
 0x128   : > { %v798_v43 = vpop.f32.mrf.mxu0  ;;  %v806_v44 = vpop.f32.mrf.mxu1 }
 0x129   : > { %485 = vst.msk [vmem:[#allocation2 + $0x8] sm:$0xff] %vm483_vm1, %v468_v41  ;;  %493 = vst.msk [vmem:[#allocation2 + $0x48] sm:$0xff] %vm483_vm1, %v476_v42  ;;  %v473_v47 = vadd.f32 %v798_v43, %v232_v39  ;;  %v481_v48 = vadd.f32 %v806_v44, %v240_v40 }
 0x12a   : > { %v420_v49 = vpop.f32.mrf.mxu0  ;;  %v452_v50 = vpop.f32.mrf.mxu1 }
 0x12b   : > { %490 = vst.msk [vmem:[#allocation2 + $0x30] sm:$0xff] %vm483_vm1, %v473_v47  ;;  %498 = vst.msk [vmem:[#allocation2 + $0x70] sm:$0xff] %vm483_vm1, %v481_v48  ;;  %v471_v53 = vadd.f32 %v420_v49, %v230_v45  ;;  %v479_v54 = vadd.f32 %v452_v50, %v238_v46 }
 0x12c   : > { %v799_v55 = vpop.f32.mrf.mxu0  ;;  %v807_v56 = vpop.f32.mrf.mxu1 }
 0x12d   : > { %488 = vst.msk [vmem:[#allocation2 + $0x20] sm:$0xff] %vm483_vm1, %v471_v53  ;;  %496 = vst.msk [vmem:[#allocation2 + $0x60] sm:$0xff] %vm483_vm1, %v479_v54  ;;  %v474_v59 = vadd.f32 %v799_v55, %v233_v51  ;;  %v482_v60 = vadd.f32 %v807_v56, %v241_v52  ;;  %503 = sbr.rel (%p725_p11) target bundleno = 317 (0x13d), region = 40 }
 0x12e   : > { %v423_v61 = vpop.f32.mrf.mxu0  ;;  %v455_v62 = vpop.f32.mrf.mxu1 }
 0x12f   : > { %491 = vst.msk [vmem:[#allocation2 + $0x38] sm:$0xff] %vm483_vm1, %v474_v59  ;;  %499 = vst.msk [vmem:[#allocation2 + $0x78] sm:$0xff] %vm483_vm1, %v482_v60  ;;  %v472_v63 = vadd.f32 %v423_v61, %v231_v57  ;;  %v480_v0 = vadd.f32 %v455_v62, %v239_v58 }
 0x131   : > { %489 = vst.msk [vmem:[#allocation2 + $0x28] sm:$0xff] %vm483_vm1, %v472_v63  ;;  %497 = vst.msk [vmem:[#allocation2 + $0x68] sm:$0xff] %vm483_vm1, %v480_v0 }
 0x132   : > { %v504_v1 = vld [vmem:[#allocation2] sm:$0xff]  ;;  %vm584_vm2 = vcmask 519168   ;;  %v505_v2 = vld [vmem:[#allocation2 + $0x8] sm:$0xff]  ;;  %v506_v3 = vld [vmem:[#allocation2 + $0x10] sm:$0xff] }
 0x133   : > { %v744_v4 = vpack.c.bf16 %v504_v1, %v504_v1  ;;  %v745_v5 = vpack.c.bf16 %v505_v2, %v505_v2  ;;  %v746_v6 = vpack.c.bf16 %v506_v3, %v506_v3  ;;  %v507_v7 = vld [vmem:[#allocation2 + $0x18] sm:$0xff]  ;;  %v510_v13 = vld [vmem:[#allocation2 + $0x30] sm:$0xff]  ;;  %v512_v15 = vld [vmem:[#allocation2 + $0x40] sm:$0xff] }
 0x134   : > { %v508_v8 = vld [vmem:[#allocation2 + $0x20] sm:$0xff]  ;;  %v747_v10 = vpack.c.bf16 %v507_v7, %v507_v7  ;;  %v750_v16 = vpack.c.bf16 %v510_v13, %v510_v13  ;;  %v752_v18 = vpack.c.bf16 %v512_v15, %v512_v15  ;;  %v513_v19 = vld [vmem:[#allocation2 + $0x48] sm:$0xff]  ;;  %v514_v20 = vld [vmem:[#allocation2 + $0x50] sm:$0xff] }
 0x135   : > { %v748_v11 = vpack.c.bf16 %v508_v8, %v508_v8  ;;  %585 = vst.msk [vmem:[%s1138_s23] sm:$0xf] %vm584_vm2, %v744_v4  ;;  %586 = vst.msk [vmem:[%s1138_s23 + $0x4] sm:$0xf] %vm584_vm2, %v745_v5  ;;  %v515_v21 = vld [vmem:[#allocation2 + $0x58] sm:$0xff]  ;;  %v753_v22 = vpack.c.bf16 %v513_v19, %v513_v19  ;;  %v754_v23 = vpack.c.bf16 %v514_v20, %v514_v20  ;;  %v516_v25 = vld [vmem:[#allocation2 + $0x60] sm:$0xff] }
 0x136   : > { %v511_v14 = vld [vmem:[#allocation2 + $0x38] sm:$0xff]  ;;  %587 = vst.msk [vmem:[%s1138_s23 + $0x8] sm:$0xf] %vm584_vm2, %v746_v6  ;;  %588 = vst.msk [vmem:[%s1138_s23 + $0xc] sm:$0xf] %vm584_vm2, %v747_v10  ;;  %v755_v24 = vpack.c.bf16 %v515_v21, %v515_v21  ;;  %v518_v27 = vld [vmem:[#allocation2 + $0x70] sm:$0xff]  ;;  %v756_v28 = vpack.c.bf16 %v516_v25, %v516_v25 }
 0x137   : > { %v751_v17 = vpack.c.bf16 %v511_v14, %v511_v14  ;;  %589 = vst.msk [vmem:[%s1138_s23 + $0x10] sm:$0xf] %vm584_vm2, %v748_v11  ;;  %591 = vst.msk [vmem:[%s1138_s23 + $0x18] sm:$0xf] %vm584_vm2, %v750_v16  ;;  %v758_v30 = vpack.c.bf16 %v518_v27, %v518_v27  ;;  %v519_v31 = vld [vmem:[#allocation2 + $0x78] sm:$0xff] }
 0x138   : > { %v509_v9 = vld [vmem:[#allocation2 + $0x28] sm:$0xff]  ;;  %593 = vst.msk [vmem:[%s1138_s23 + $0x20] sm:$0xf] %vm584_vm2, %v752_v18  ;;  %594 = vst.msk [vmem:[%s1138_s23 + $0x24] sm:$0xf] %vm584_vm2, %v753_v22  ;;  %v759_v32 = vpack.c.bf16 %v519_v31, %v519_v31 }
 0x139   : > { %v749_v12 = vpack.c.bf16 %v509_v9, %v509_v9  ;;  %v517_v26 = vld [vmem:[#allocation2 + $0x68] sm:$0xff]  ;;  %592 = vst.msk [vmem:[%s1138_s23 + $0x1c] sm:$0xf] %vm584_vm2, %v751_v17  ;;  %595 = vst.msk [vmem:[%s1138_s23 + $0x28] sm:$0xf] %vm584_vm2, %v754_v23 }
 0x13a   : > { %v757_v29 = vpack.c.bf16 %v517_v26, %v517_v26  ;;  %596 = vst.msk [vmem:[%s1138_s23 + $0x2c] sm:$0xf] %vm584_vm2, %v755_v24  ;;  %597 = vst.msk [vmem:[%s1138_s23 + $0x30] sm:$0xf] %vm584_vm2, %v756_v28 }
 0x13b   : > { %590 = vst.msk [vmem:[%s1138_s23 + $0x14] sm:$0xf] %vm584_vm2, %v749_v12  ;;  %599 = vst.msk [vmem:[%s1138_s23 + $0x38] sm:$0xf] %vm584_vm2, %v758_v30 }
 0x13c   : > { %598 = vst.msk [vmem:[%s1138_s23 + $0x34] sm:$0xf] %vm584_vm2, %v757_v29  ;;  %600 = vst.msk [vmem:[%s1138_s23 + $0x3c] sm:$0xf] %vm584_vm2, %v759_v32 }
 0x13d PF: > { %s15_s16 = sadd.s32 1, %s1010_s16   ;;  %s1252_s9 = smov %s986_s10 }
 0x13e   : > { %p12_p12 = scmp.ge.s32.totalorder %s15_s16, 11   ;;  %s1253_s10 = smov %s990_s11 }
 0x13f   : > { %s1254_s11 = smov %s1099_s29  ;;  %s1255_s12 = smov %s1002_s14 }
 0x140   : > { %s1256_s13 = smov %s1006_s15  ;;  %s1257_s14 = smov %s1260_s18 }
 0x141   : > { %s1258_s15 = smov %s1264_s19  ;;  %14 = sbr.rel (!%p12_p12) target bundleno = 5 (0x5), region = 79 }
 0x146   :  { %623 = vsyncpa [#allocation4], 1 }
 0x147   :  { %625 = vsyncpa [#allocation4 + $0x1], 1 }

</bundles_post_ra>
